<compile_context>
chip_gen: v7x
topology: tpu7x:2x2x1
jax: 0.10.0
libtpu: 0.0.40
codegen_flags: <defaults>
</compile_context>

<pallas_src>
import functools

import jax
import jax.numpy as jnp
from jax.experimental import pallas as pl
from jax.experimental.pallas import tpu as pltpu


def _attention_kernel(g_ref, x_ref, wg_ref, wx_ref, wp_ref, b1_ref, tp_ref,
                      out_ref):
    """One (batch, P-block) tile, channels-first.

    g_ref : (F_g, TM)   gating-signal block      (positions on lanes)
    x_ref : (F_l, TM)   skip-connection block
    wg_ref: (F_int, F_g)   BN-folded W_g^T
    wx_ref: (F_int, F_l)   BN-folded W_x^T
    wp_ref: (1, F_int)     BN-folded psi weight row
    b1_ref: (F_int, 1)     combined branch bias (tg + tx), lane-broadcast
    tp_ref: (1, 1)         psi shift
    out   : (F_l, TM)
    """
    x = x_ref[...].astype(jnp.float32)
    g = g_ref[...].astype(jnp.float32)

    # 1x1 convs == channel matmuls; BN scale already folded into the weights.
    g1 = jnp.dot(wg_ref[...], g, preferred_element_type=jnp.float32)
    x1 = jnp.dot(wx_ref[...], x, preferred_element_type=jnp.float32)

    a = jnp.maximum(g1 + x1 + b1_ref[...], 0.0)          # (F_int, TM)

    # psi branch: (1, F_int) @ (F_int, TM) -> lane-dense (1, TM)
    p = jnp.dot(wp_ref[...], a, preferred_element_type=jnp.float32)
    psi = jax.nn.sigmoid(p + tp_ref[...])                 # (1, TM)

    out_ref[...] = (x * psi).astype(out_ref.dtype)         # broadcast over rows


def _fold_bn(bias, gamma, beta, mean, var, eps=1e-5):
    s = gamma / jnp.sqrt(var + eps)
    t = (bias - mean) * s + beta
    return s.astype(jnp.float32), t.astype(jnp.float32)


def _choose_tile(P, F_g, F_l, itemsize=4,
                 vmem_budget_bytes=24 * 1024 * 1024, max_tile=2048):
    """Pick the P-axis tile from a VMEM budget (double-buffered g/x/out)."""
    per_col = 2 * itemsize * (F_g + 2 * F_l)          # bytes per position column
    t = min(max_tile, max(vmem_budget_bytes // max(per_col, 1), 256))
    if P <= t:
        return P                                      # whole spatial extent
    return max((t // 256) * 256, 256)                 # multiple of 256 (MXU/lane)


@functools.partial(jax.jit, static_argnames=("max_tile",))
def attention_block(g, x, params, max_tile=2048):
    """g: (N, F_g, H, W), x: (N, F_l, H, W)  ->  (N, F_l, H, W)."""
    N, F_g, H, W = g.shape
    _, F_l, _, _ = x.shape
    F_int = params["wg"].shape[1]
    P = H * W

    # NCHW -> (N, C, P): pure reshape, no transpose, no data movement.
    g3 = g.reshape(N, F_g, P)
    x3 = x.reshape(N, F_l, P)

    # Fold conv bias + BatchNorm (eval) into per-channel scale/shift, then
    # fold the scales into the conv weights and pre-sum the branch biases.
    sg, tg = _fold_bn(params["bg"], params["gamma_g"], params["beta_g"],
                      params["mean_g"], params["var_g"])
    sx, tx = _fold_bn(params["bx"], params["gamma_x"], params["beta_x"],
                      params["mean_x"], params["var_x"])
    sp, tp = _fold_bn(params["bp"], params["gamma_p"], params["beta_p"],
                      params["mean_p"], params["var_p"])

    wg_t = (params["wg"].astype(jnp.float32) * sg[None, :]).T   # (F_int, F_g)
    wx_t = (params["wx"].astype(jnp.float32) * sx[None, :]).T   # (F_int, F_l)
    wp_t = (params["wp"].astype(jnp.float32) * sp[None, :]).T   # (1, F_int)
    b1 = (tg + tx).reshape(F_int, 1)                            # (F_int, 1)
    tp2 = tp.reshape(1, 1)                                      # (1, 1)

    tile = _choose_tile(P, F_g, F_l)
    grid = (N, pl.cdiv(P, tile))

    # Explicit VMEM budget: double-buffered g/x/out blocks + params, headroom,
    # capped at 48 MiB (fits v7x's 64 MiB physical VMEM).
    need = 2 * 4 * tile * (F_g + 2 * F_l) + 4 * (F_int * (F_g + F_l + 2) + 16)
    vmem_limit = int(min(48 * 1024 * 1024, max(2 * need, 8 * 1024 * 1024)))

    row = lambda c: pl.BlockSpec((None, c, tile), lambda n, p: (n, 0, p))
    full = lambda shp: pl.BlockSpec(shp, lambda n, p: (0, 0))

    out = pl.pallas_call(
        _attention_kernel,
        out_shape=jax.ShapeDtypeStruct((N, F_l, P), x.dtype),
        grid_spec=pltpu.PrefetchScalarGridSpec(
            num_scalar_prefetch=0,
            grid=grid,
            in_specs=[
                row(F_g),                    # g block   (F_g, tile)
                row(F_l),                    # x block   (F_l, tile)
                full((F_int, F_g)),          # wg_t
                full((F_int, F_l)),          # wx_t
                full((1, F_int)),            # wp_t
                full((F_int, 1)),            # b1
                full((1, 1)),                # tp
            ],
            out_specs=row(F_l),
        ),
        compiler_params=pltpu.CompilerParams(
            dimension_semantics=("parallel", "parallel"),
            vmem_limit_bytes=vmem_limit,
        ),
    )(g3, x3, wg_t, wx_t, wp_t, b1, tp2)

    return out.reshape(N, F_l, H, W)         # pure reshape back to NCHW


def init_params(key, F_g, F_l, F_int):
    ks = jax.random.split(key, 12)
    return {
        # 1x1 conv weights stored as (C_in, C_out)
        "wg": jax.random.normal(ks[0], (F_g, F_int), jnp.float32) * 0.1,
        "bg": jax.random.normal(ks[1], (F_int,), jnp.float32) * 0.1,
        "wx": jax.random.normal(ks[2], (F_l, F_int), jnp.float32) * 0.1,
        "bx": jax.random.normal(ks[3], (F_int,), jnp.float32) * 0.1,
        "wp": jax.random.normal(ks[4], (F_int, 1), jnp.float32) * 0.1,
        "bp": jax.random.normal(ks[5], (1,), jnp.float32) * 0.1,
        # BatchNorm (eval-mode running stats)
        "gamma_g": 1.0 + 0.1 * jax.random.normal(ks[6], (F_int,), jnp.float32),
        "beta_g": 0.1 * jax.random.normal(ks[7], (F_int,), jnp.float32),
        "mean_g": 0.1 * jax.random.normal(ks[8], (F_int,), jnp.float32),
        "var_g": jnp.abs(1.0 + 0.1 * jax.random.normal(ks[9], (F_int,), jnp.float32)),
        "gamma_x": 1.0 + 0.05 * jax.random.normal(ks[10], (F_int,), jnp.float32),
        "beta_x": 0.05 * jax.random.normal(ks[11], (F_int,), jnp.float32),
        "mean_x": jnp.zeros((F_int,), jnp.float32),
        "var_x": jnp.ones((F_int,), jnp.float32),
        "gamma_p": jnp.ones((1,), jnp.float32),
        "beta_p": jnp.zeros((1,), jnp.float32),
        "mean_p": jnp.zeros((1,), jnp.float32),
        "var_p": jnp.ones((1,), jnp.float32),
    }


def _reference(g, x, params, eps=1e-5):
    """Pure-JAX reference mirroring the PyTorch forward (BN in eval mode)."""
    def branch(inp, w, b, gamma, beta, mean, var):
        y = jnp.einsum("nchw,cf->nfhw", inp, w) + b[None, :, None, None]
        y = (y - mean[None, :, None, None]) / jnp.sqrt(var[None, :, None, None] + eps)
        return y * gamma[None, :, None, None] + beta[None, :, None, None]

    g1 = branch(g, params["wg"], params["bg"], params["gamma_g"],
                params["beta_g"], params["mean_g"], params["var_g"])
    x1 = branch(x, params["wx"], params["bx"], params["gamma_x"],
                params["beta_x"], params["mean_x"], params["var_x"])
    a = jnp.maximum(g1 + x1, 0.0)
    p = branch(a, params["wp"], params["bp"], params["gamma_p"],
               params["beta_p"], params["mean_p"], params["var_p"])
    psi = jax.nn.sigmoid(p)              # (N, 1, H, W)
    return x * psi


if __name__ == "__main__":
    key = jax.random.PRNGKey(0)
    kg, kx, kp = jax.random.split(key, 3)

    N, F_g, F_l, F_int, H, W = 2, 4, 4, 8, 16, 16
    g = jax.random.normal(kg, (N, F_g, H, W), jnp.float32)
    x = jax.random.normal(kx, (N, F_l, H, W), jnp.float32)
    params = init_params(kp, F_g, F_l, F_int)

    out = attention_block(g, x, params)
    out = jax.block_until_ready(out)

    ref = _reference(g, x, params)
    assert out.shape == (N, F_l, H, W)
    assert jnp.allclose(out, ref, atol=1e-5, rtol=1e-5), \
        f"max err {jnp.max(jnp.abs(out - ref))}"

    print("KERNEL_OK")
</pallas_src>

<mosaic_0001>
module attributes {stable_mosaic.version = 11 : i64} {
  func.func @_attention_kernel(%arg0: i32, %arg1: i32, %arg2: memref<1x4x256xf32, #tpu.memory_space<vmem>>, %arg3: memref<1x4x256xf32, #tpu.memory_space<vmem>>, %arg4: memref<8x4xf32, #tpu.memory_space<vmem>>, %arg5: memref<8x4xf32, #tpu.memory_space<vmem>>, %arg6: memref<1x8xf32, #tpu.memory_space<vmem>>, %arg7: memref<8x1xf32, #tpu.memory_space<vmem>>, %arg8: memref<1x1xf32, #tpu.memory_space<vmem>>, %arg9: memref<1x4x256xf32, #tpu.memory_space<vmem>>) attributes {dimension_semantics = [#tpu.dimension_semantics<parallel>, #tpu.dimension_semantics<parallel>], iteration_bounds = array<i64: 2, 1>, scalar_prefetch = 0 : i64, scratch_operands = 0 : i64, tpu.core_type = #tpu.core_type<tc>, window_params = [{transform_indices = @transform_0, window_bounds = array<i64: 1, 4, 256>}, {transform_indices = @transform_1, window_bounds = array<i64: 1, 4, 256>}, {pipeline_mode = #tpu.pipeline_mode<synchronous>, transform_indices = @transform_2, window_bounds = array<i64: 8, 4>}, {pipeline_mode = #tpu.pipeline_mode<synchronous>, transform_indices = @transform_3, window_bounds = array<i64: 8, 4>}, {pipeline_mode = #tpu.pipeline_mode<synchronous>, transform_indices = @transform_4, window_bounds = array<i64: 1, 8>}, {pipeline_mode = #tpu.pipeline_mode<synchronous>, transform_indices = @transform_5, window_bounds = array<i64: 8, 1>}, {pipeline_mode = #tpu.pipeline_mode<synchronous>, transform_indices = @transform_6, window_bounds = array<i64: 1, 1>}, {transform_indices = @transform_7, window_bounds = array<i64: 1, 4, 256>}]} {
    %c0 = arith.constant 0 : index
    %c0_0 = arith.constant 0 : index
    %c0_1 = arith.constant 0 : index
    %0 = vector.load %arg3[%c0, %c0_0, %c0_1] : memref<1x4x256xf32, #tpu.memory_space<vmem>>, vector<1x4x256xf32>
    %1 = vector.shape_cast %0 : vector<1x4x256xf32> to vector<4x256xf32>
    %c0_2 = arith.constant 0 : index
    %c0_3 = arith.constant 0 : index
    %c0_4 = arith.constant 0 : index
    %2 = vector.load %arg2[%c0_2, %c0_3, %c0_4] : memref<1x4x256xf32, #tpu.memory_space<vmem>>, vector<1x4x256xf32>
    %3 = vector.shape_cast %2 : vector<1x4x256xf32> to vector<4x256xf32>
    %c0_5 = arith.constant 0 : index
    %c0_6 = arith.constant 0 : index
    %4 = vector.load %arg4[%c0_5, %c0_6] : memref<8x4xf32, #tpu.memory_space<vmem>>, vector<8x4xf32>
    %cst = arith.constant dense<0.000000e+00> : vector<8x256xf32>
    %5 = tpu.matmul %4, %3, %cst {dimension_numbers = #tpu.dot_dimension_numbers<[1], [0], [0], [1], [0, 0, 1, 1], [], []>} : vector<8x4xf32>, vector<4x256xf32>, vector<8x256xf32> -> vector<8x256xf32>
    %c0_7 = arith.constant 0 : index
    %c0_8 = arith.constant 0 : index
    %6 = vector.load %arg5[%c0_7, %c0_8] : memref<8x4xf32, #tpu.memory_space<vmem>>, vector<8x4xf32>
    %cst_9 = arith.constant dense<0.000000e+00> : vector<8x256xf32>
    %7 = tpu.matmul %6, %1, %cst_9 {dimension_numbers = #tpu.dot_dimension_numbers<[1], [0], [0], [1], [0, 0, 1, 1], [], []>} : vector<8x4xf32>, vector<4x256xf32>, vector<8x256xf32> -> vector<8x256xf32>
    %8 = arith.addf %5, %7 : vector<8x256xf32>
    %c0_10 = arith.constant 0 : index
    %c0_11 = arith.constant 0 : index
    %9 = vector.load %arg7[%c0_10, %c0_11] : memref<8x1xf32, #tpu.memory_space<vmem>>, vector<8x1xf32>
    %10 = vector.broadcast %9 : vector<8x1xf32> to vector<8x256xf32>
    %11 = arith.addf %8, %10 : vector<8x256xf32>
    %cst_12 = arith.constant 0.000000e+00 : f32
    %12 = vector.broadcast %cst_12 : f32 to vector<8x256xf32>
    %13 = arith.maximumf %11, %12 : vector<8x256xf32>
    %c0_13 = arith.constant 0 : index
    %c0_14 = arith.constant 0 : index
    %14 = vector.load %arg6[%c0_13, %c0_14] : memref<1x8xf32, #tpu.memory_space<vmem>>, vector<1x8xf32>
    %cst_15 = arith.constant dense<0.000000e+00> : vector<1x256xf32>
    %15 = tpu.matmul %14, %13, %cst_15 {dimension_numbers = #tpu.dot_dimension_numbers<[1], [0], [0], [1], [0, 0, 1, 1], [], []>} : vector<1x8xf32>, vector<8x256xf32>, vector<1x256xf32> -> vector<1x256xf32>
    %c0_16 = arith.constant 0 : index
    %c0_17 = arith.constant 0 : index
    %16 = vector.load %arg8[%c0_16, %c0_17] : memref<1x1xf32, #tpu.memory_space<vmem>>, vector<1x1xf32>
    %17 = vector.broadcast %16 : vector<1x1xf32> to vector<1x256xf32>
    %18 = arith.addf %15, %17 : vector<1x256xf32>
    %19 = arith.negf %18 : vector<1x256xf32>
    %20 = math.exp %19 : vector<1x256xf32>
    %cst_18 = arith.constant 1.000000e+00 : f32
    %21 = vector.broadcast %cst_18 : f32 to vector<1x256xf32>
    %22 = arith.addf %21, %20 : vector<1x256xf32>
    %23 = arith.divf %21, %22 : vector<1x256xf32>
    %24 = vector.broadcast %23 : vector<1x256xf32> to vector<4x256xf32>
    %25 = arith.mulf %1, %24 : vector<4x256xf32>
    %c0_19 = arith.constant 0 : index
    %c0_20 = arith.constant 0 : index
    %c0_21 = arith.constant 0 : index
    %26 = vector.load %arg9[%c0_19, %c0_20, %c0_21] : memref<1x4x256xf32, #tpu.memory_space<vmem>>, vector<1x4x256xf32>
    %27 = vector.shape_cast %26 : vector<1x4x256xf32> to vector<4x256xf32>
    %28 = vector.shape_cast %25 : vector<4x256xf32> to vector<1x4x256xf32>
    tpu.vector_store %arg9[%c0_19, %c0_20, %c0_21], %28 {strides = array<i32>} : memref<1x4x256xf32, #tpu.memory_space<vmem>>, vector<1x4x256xf32>,
    return
  }
  func.func @transform_0(%arg0: i32, %arg1: i32) -> (i32, i32, i32) {
    %c0_i32 = arith.constant 0 : i32
    %c0_i32_0 = arith.constant 0 : i32
    return %arg0, %c0_i32, %arg1 : i32, i32, i32
  }
  func.func @transform_1(%arg0: i32, %arg1: i32) -> (i32, i32, i32) {
    %c0_i32 = arith.constant 0 : i32
    %c0_i32_0 = arith.constant 0 : i32
    return %arg0, %c0_i32, %arg1 : i32, i32, i32
  }
  func.func @transform_2(%arg0: i32, %arg1: i32) -> (i32, i32) {
    %c0_i32 = arith.constant 0 : i32
    %c0_i32_0 = arith.constant 0 : i32
    %c0_i32_1 = arith.constant 0 : i32
    return %c0_i32, %c0_i32_0 : i32, i32
  }
  func.func @transform_3(%arg0: i32, %arg1: i32) -> (i32, i32) {
    %c0_i32 = arith.constant 0 : i32
    %c0_i32_0 = arith.constant 0 : i32
    %c0_i32_1 = arith.constant 0 : i32
    return %c0_i32, %c0_i32_0 : i32, i32
  }
  func.func @transform_4(%arg0: i32, %arg1: i32) -> (i32, i32) {
    %c0_i32 = arith.constant 0 : i32
    %c0_i32_0 = arith.constant 0 : i32
    %c0_i32_1 = arith.constant 0 : i32
    return %c0_i32, %c0_i32_0 : i32, i32
  }
  func.func @transform_5(%arg0: i32, %arg1: i32) -> (i32, i32) {
    %c0_i32 = arith.constant 0 : i32
    %c0_i32_0 = arith.constant 0 : i32
    %c0_i32_1 = arith.constant 0 : i32
    return %c0_i32, %c0_i32_0 : i32, i32
  }
  func.func @transform_6(%arg0: i32, %arg1: i32) -> (i32, i32) {
    %c0_i32 = arith.constant 0 : i32
    %c0_i32_0 = arith.constant 0 : i32
    %c0_i32_1 = arith.constant 0 : i32
    return %c0_i32, %c0_i32_0 : i32, i32
  }
  func.func @transform_7(%arg0: i32, %arg1: i32) -> (i32, i32, i32) {
    %c0_i32 = arith.constant 0 : i32
    %c0_i32_0 = arith.constant 0 : i32
    return %arg0, %c0_i32, %arg1 : i32, i32, i32
  }
}

</mosaic_0001>

<bundles_post_ra>
// kernel: attention_block.1
= control target key start
LH: loop header
LB: loop body
LE: loop exit
PB: predicated region body
PF: predicated region fallthrough
CT: control target
= control target key end

     0   :  { %s882_s26 = smov 0   ;;  %s884_s27 = smov 0   ;;  %s935_s0 = inlined_call_operand.vmem [shape: f32[2,4,256], index: 0, kind: input, shape index: {}]   ;;  %s936_s1 = inlined_call_operand.vmem [shape: f32[2,4,256], index: 1, kind: input, shape index: {}]   ;;  %s937_s2 = inlined_call_operand.vmem [shape: f32[8,4], index: 2, kind: input, shape index: {}]   ;;  %s938_s3 = inlined_call_operand.vmem [shape: f32[8,4], index: 3, kind: input, shape index: {}]   ;;  %s939_s4 = inlined_call_operand.vmem [shape: f32[1,8], index: 4, kind: input, shape index: {}]   ;;  %s940_s5 = inlined_call_operand.vmem [shape: f32[8,1], index: 5, kind: input, shape index: {}]   ;;  %s941_s6 = inlined_call_operand.<no memory space> [shape: f32[1,1], index: 6, kind: input, shape index: {}]   ;;  %s942_s7 = inlined_call_operand.vmem [shape: f32[2,4,256], index: 7, kind: output, shape index: {}]  }
   0x1   :  { %v12_v0 = vstv %s941_s6  ;;  %s886_s28 = smov 0  }
   0x2   :  { %13 = vst [vmem:[#allocation2] sm:$0x1] %v12_v0 }
   0x3 LB: > { %s31_s6 = sadd.s32 1, %s831_s27  ;;  %p753_p0 = scmp.ge.s32.totalorder %s835_s28, 1  ;;  %s835_s28 = sphi %s886_s28, %s19_s28   ;;  %s831_s27 = sphi %s884_s27, %s944_s27   ;;  %s827_s26 = sphi %s882_s26, %s943_s26  }
   0x4   : > { %p33_p1 = scmp.ge.s32.totalorder %s31_s6, 2  ;;  %p277_p2 = scmp.lt.s32.totalorder %s835_s28, 3 }
   0x6   : > { %s946_s6 = smov (%p33_p1, %s31_s6), 0  ;;  %p278_p3 = pnand %p753_p0, %p277_p2 }
   0x7   : > { %p327_p4 = scmp.lt.s32.totalorder (!%p278_p3), %s827_s26, 1  ;;  %v837_v1 = vmov (!%p278_p3), 0.0   ;;  %v522_v2 = vld [vmem:[%s940_s5] sm:$0xff] (!%p278_p3)  ;;  %v838_v3 = vmov (!%p278_p3), 0   ;;  %vm366_vm0 = vcmask (!%p278_p3), 1043456   ;;  %vm362_vm1 = vcmask (!%p278_p3), 31744  }
   0x8   : > { %281 = sbr.rel (%p278_p3) target bundleno = 498 (0x1f2), region = 48  ;;  %435 = vmatprep.mubr.f32.mxu0 (!%p278_p3), %v837_v1  ;;  %611 = vmatprep.mubr.f32.mxu1 (!%p278_p3), %v837_v1  ;;  %v359_v9 = vld [vmem:[%s938_s3] sm:$0xff] (!%p278_p3)  ;;  %vm543_vm2 = vcmask (!%p278_p3), 64512   ;;  %v539_v19 = vlaneseq (!%p278_p3) }
   0x9   : > { %802 = vset.pattern.permute.xlu0 (!%p278_p3), %v838_v3  ;;  %v533_v4 = vld [vmem:[#allocation2] sm:$0x1] (!%p278_p3) }
   0xa   : > { %525 = vperm.xlu0 (!%p278_p3), %802, %v522_v2   ;;  %v358_v10 = vld [vmem:[%s937_s2] sm:$0xff] (!%p278_p3)  ;;  %v540_v20 = vshrl.u32 (!%p278_p3), %v539_v19, 7 }
   0xb   : > { %v532_v18 = vld [vmem:[%s939_s4] sm:$0x1] (!%p278_p3) }
   0xc   : > { %v541_v21 = vsub.s32 (!%p278_p3), 0, %v540_v20 }
   0xe   : > { %536 = vperm.xlu0 (!%p278_p3), %802, %v533_v4  }
   0xf   : > { %s948_s26 = smov (!%p327_p4, %s827_s26), 1 }
  0x10   : > { %s903_s8 = sshll.u32 %s948_s26, 3 }
  0x11   : > { %s334_s11 = scalar_lea.vmem %s935_s0, %s903_s8  ;;  %s344_s14 = scalar_lea.vmem %s936_s1, %s903_s8 }
  0x12   : > { %v356_v5 = vld [vmem:[%s344_s14] sm:$0xff]  ;;  %s354_s23 = scalar_lea.vmem %s942_s7, %s903_s8 }
  0x13   : > { %v357_v6 = vld [vmem:[%s334_s11] sm:$0xff]  ;;  %v361_v7 = vcombine.high %v356_v5, %v356_v5 }
  0x14   : > { %v443_v8 = vcombine.high %v357_v6, %v357_v6 }
  0x15   : > { %760 = vmatprep.subr.msk.mxu0 %vm366_vm0, %v361_v7 }
  0x16   : > { %761 = vmatpush1.msk.msra.mxu0 %vm366_vm0, %v356_v5 }
  0x17   : > { %762 = vmatmul.mubr.msk.f32.vlgmr.msra.gmra.mrb[0].mxu0 %vm362_vm1, %v359_v9  ;;  %763 = vmatprep.subr.msk.mxu0 %vm366_vm0, %v443_v8 }
  0x18   : > { %764 = vmatpush1.msk.msra.mxu0 %vm366_vm0, %v357_v6  ;;  %515 = vmatprep.mubr.f32.mxu0 %v837_v1 }
  0x1f   : > { %765 = vmatmul.mubr.msk.f32.vlgmr.msra.gmra.mrb[0].mxu0 %vm362_vm1, %v358_v10 }
  0x89   : > { %v526_v11 = vpop.permute.xlu0 %525 }
  0x8d   : > { %v537_v22 = vpop.permute.xlu0 %536 }
  0x8e   : > { %v542_v23 = vrot.slane %v537_v22, %v541_v21 }
  0xf2   : > { %v517_v12 = vpop.f32.mrb[0].mxu0 }
  0xf3   : > { %v528_v13 = vadd.f32 %v526_v11, %v517_v12  ;;  %v519_v14 = vpop.f32.mrb[1].mxu0 }
  0xf4   : > { %v529_v15 = vadd.f32 %v526_v11, %v519_v14 }
  0xf5   : > { %v530_v17 = vmax.f32 %v528_v13, 0.0 }
  0xf6   : > { %v531_v16 = vmax.f32 %v529_v15, 0.0 }
  0xf8   : > { %547 = vmatprep.subr.mxu1 %v531_v16 }
  0xf9   : > { %548 = vmatpush1.msra.mxu1 %v530_v17 }
  0xfa   : > { %766 = vmatmul.mubr.msk.f32.vlgmr.msra.gmra.mrb[0].mxu1 %vm543_vm2, %v532_v18 }
 0x1cd   : > { %v613_v24 = vpop.f32.mrb[0].mxu1 }
 0x1ce   : > { %v614_v25 = vadd.f32 %v613_v24, %v542_v23  ;;  %v615_v26 = vpop.f32.mrb[1].mxu1 }
 0x1cf   : > { %v616_v27 = vadd.f32 %v615_v26, %v542_v23 }
 0x1d0   : > { %v767_v28 = vmul.f32 -1.442695, %v614_v25 }
 0x1d1   : > { %v768_v29 = vmul.f32 -1.442695, %v616_v27 }
 0x1d2   : > { %805 = vpow2.f32 %v767_v28 }
 0x1d3   : > { %807 = vpow2.f32 %v768_v29 }
 0x1dc   : > { %v806_v30 = vpop.eup %805 }
 0x1dd   : > { %v808_v31 = vpop.eup %807  ;;  %v624_v32 = vadd.f32 1.0, %v806_v30 }
 0x1de   : > { %v625_v33 = vadd.f32 1.0, %v808_v31 }
 0x1df   : > { %809 = vrcp.f32 %v624_v32 }
 0x1e0   : > { %811 = vrcp.f32 %v625_v33 }
 0x1e9   : > { %v810_v34 = vpop.eup %809 }
 0x1ea   : > { %v812_v35 = vpop.eup %811  ;;  %v633_v36 = vrot.slane %v810_v34, %v541_v21 }
 0x1eb   : > { %v637_v37 = vrot.slane %v812_v35, %v541_v21 }
 0x1ed   : > { %v640_v38 = vcombine.low %v633_v36, %v637_v37 }
 0x1ef   : > { %v642_v39 = vmul.f32 %v640_v38, %v356_v5 }
 0x1f1   : > { %643 = vst [vmem:[%s354_s23] sm:$0xff] %v642_v39 }
 0x1f2 PF: > { %s19_s28 = sadd.s32 1, %s835_s28   ;;  %s943_s26 = smov %s831_s27 }
 0x1f3   : > { %p16_p5 = scmp.ge.s32.totalorder %s19_s28, 4   ;;  %s944_s27 = smov %s946_s6 }
 0x1f5   :  { %18 = sbr.rel (!%p16_p5) target bundleno = 3 (0x3), region = 81 }

</bundles_post_ra>
